<compile_context>
chip_gen: v7x
topology: tpu7x:2x2x1
jax: 0.10.0
libtpu: 0.0.40
codegen_flags: <defaults>
</compile_context>

<pallas_src>
import functools

import jax
import jax.numpy as jnp
from jax.experimental import pallas as pl
from jax.experimental.pallas import tpu as pltpu

SMOOTH = 1e-5


def _target_block_bytes():
    """Per-generation logits-block budget (fits the scoped-VMEM defaults)."""
    try:
        kind = jax.devices()[0].device_kind.lower()
    except Exception:
        kind = ""
    if "v6" in kind or "v7" in kind:
        return 8 << 20      # 32 MiB scoped-VMEM default comfortably holds 2x8 MiB
    return 4 << 20          # v5e (16 MiB default) and anything unknown/older


def _gdice_kernel(x_ref, lab_ref, o_ref, sy_acc, ss_acc, si_acc, *,
                  smooth, has_invalid, approx_recip):
    """Grid = (batch, spatial_tile).

    x_ref   : (1, C, TNt, 128) logits block (native dtype)
    lab_ref : (1, TNt, 128)    int8/int32 labels (-1 on padded pixels)
    o_ref   : (1, 8, 128)      f32 per-batch 'divided' (broadcast), written on
                               the last spatial tile only
    sy_acc, ss_acc, si_acc : (C, 128) f32 VMEM partial-sum accumulators
    """
    s = pl.program_id(1)
    ns = pl.num_programs(1)

    @pl.when(s == 0)
    def _():
        sy_acc[...] = jnp.zeros_like(sy_acc)
        ss_acc[...] = jnp.zeros_like(ss_acc)
        si_acc[...] = jnp.zeros_like(si_acc)

    x = x_ref[0].astype(jnp.float32)          # (C, TNt, 128)
    labels = lab_ref[0].astype(jnp.int32)     # (TNt, 128)

    def accumulate(xv, valid):
        # Softmax over the channel axis. Channel is non-minor here, so the
        # per-pixel max/sum are plain VALU ops across vregs (no cross-lane XLU).
        m = jnp.max(xv, axis=0, keepdims=True)
        e = jnp.exp(xv - m)
        denom = jnp.sum(e, axis=0, keepdims=True)
        if approx_recip:
            recip = pl.reciprocal(denom, approx=True)
        else:
            recip = 1.0 / denom
        if valid is not None:
            # Fold the valid-pixel mask into the (1, TNt, 128) reciprocal so it
            # costs one multiply per pixel, not one per channel-element.
            recip = recip * valid[None].astype(jnp.float32)
        sm = e * recip                                        # (C, TNt, 128)

        # One-hot built in-kernel from integer labels (padded pixels carry
        # label -1 and match no channel).
        ch = jax.lax.broadcasted_iota(jnp.int32, xv.shape, 0)
        y = (ch == labels[None]).astype(jnp.float32)          # (C, TNt, 128)

        # Per-channel partial reductions over this spatial tile, kept lane-wise
        # (C, 128) so the cross-lane reduce happens only once per batch element.
        sy_acc[...] += jnp.sum(y, axis=1)
        ss_acc[...] += jnp.sum(sm, axis=1)
        si_acc[...] += jnp.sum(sm * y, axis=1)

    if has_invalid:
        # Padding / block overhang only exists in the trailing spatial tile;
        # every other tile runs the unmasked fast path.
        @pl.when(s < ns - 1)
        def _():
            accumulate(x, None)

        @pl.when(s == ns - 1)
        def _():
            valid = labels >= 0
            # Zero the garbage logits in the overhanging / padded region BEFORE
            # exp so no NaN/inf leaks into the masked softmax sums.
            accumulate(jnp.where(valid[None], x, 0.0), valid)
    else:
        accumulate(x, None)

    @pl.when(s == ns - 1)
    def _():
        sum_y = jnp.sum(sy_acc[...], axis=1, keepdims=True)   # (C, 1)
        sum_s = jnp.sum(ss_acc[...], axis=1, keepdims=True)   # (C, 1)
        inter = jnp.sum(si_acc[...], axis=1, keepdims=True)   # (C, 1)
        w = 1.0 / ((sum_y + 1e-10) ** 2)
        intersection = jnp.sum(w * inter)                     # 'bc->b'
        union = jnp.sum(w * (sum_s + sum_y))                  # 'bc->b'
        divided = 1.0 - 2.0 * (intersection + smooth) / (union + smooth)
        o_ref[...] = jnp.full(o_ref.shape, divided, dtype=jnp.float32)


def gdice_loss(net_output, gt, smooth=SMOOTH, approx_recip=True):
    """net_output: (B, C, H, W) float logits (any float dtype).
    gt: (B, H, W) / (B, 1, H, W) integer labels, or (B, C, H, W) one-hot."""
    B, C, H, W = net_output.shape
    N = H * W

    if gt.shape == net_output.shape:
        # TODO(synk): same-shape *soft* targets are reduced to hard labels via
        # argmax; exact parity with PyTorch only when gt is a true one-hot.
        labels = jnp.argmax(gt, axis=1).reshape(B, N)
    else:
        labels = gt.reshape(B, N)
    lab_dtype = jnp.int8 if C <= 127 else jnp.int32   # int8: 4x less HBM traffic
    labels = labels.astype(lab_dtype)

    x = net_output.reshape(B, C, N)           # logits stay in native dtype in HBM

    # Lane-dense layout: spatial axis -> (rows, 128 lanes); channel non-minor.
    nb = pl.cdiv(N, 128)
    itemsize = jnp.dtype(x.dtype).itemsize
    row_bytes = C * 128 * itemsize
    target_bytes = _target_block_bytes()
    # Tile rows are a multiple of 32 so int8 labels and f32 logits tilings align.
    max_rows = max(32, (target_bytes // row_bytes) // 32 * 32)
    if nb <= max_rows:
        tnt, num_s = nb, 1                    # single spatial tile (full extent)
    else:
        tnt = max_rows
        num_s = pl.cdiv(nb, tnt)
    nbp = tnt * num_s                         # rows covered by the grid

    # Logits are only padded when N is not lane-aligned; the common
    # grid-alignment overhang is handled in-kernel instead of via jnp.pad.
    if N % 128 != 0:
        # TODO(synk): this pad is a full extra HBM pass over the logits; only
        # hit when H*W is not a multiple of 128.
        x = jnp.pad(x, ((0, 0), (0, 0), (0, nb * 128 - N)))
    x = x.reshape(B, C, nb, 128)

    has_invalid = (nbp * 128 != N)
    if has_invalid:
        # Only the small label map gets the cheap -1 sentinel padding.
        labels = jnp.pad(labels, ((0, 0), (0, nbp * 128 - N)),
                         constant_values=-1)
    labels = labels.reshape(B, nbp, 128)

    # VMEM budget: double-buffered logits + labels blocks, scratch, output.
    x_blk = C * tnt * 128 * itemsize
    lab_blk = tnt * 128 * jnp.dtype(lab_dtype).itemsize
    need = 2 * (x_blk + lab_blk) + 3 * C * 128 * 4 + 2 * 8 * 128 * 4
    vmem_limit = max(int(1.5 * need) + (4 << 20), 16 << 20)

    kernel = functools.partial(_gdice_kernel, smooth=float(smooth),
                               has_invalid=has_invalid,
                               approx_recip=approx_recip)

    out = pl.pallas_call(
        kernel,
        out_shape=jax.ShapeDtypeStruct((B, 8, 128), jnp.float32),
        grid_spec=pltpu.PrefetchScalarGridSpec(
            num_scalar_prefetch=0,
            grid=(B, num_s),
            in_specs=[
                pl.BlockSpec((1, C, tnt, 128), lambda b, s: (b, 0, s, 0)),
                pl.BlockSpec((1, tnt, 128), lambda b, s: (b, s, 0)),
            ],
            out_specs=pl.BlockSpec((1, 8, 128), lambda b, s: (b, 0, 0)),
            scratch_shapes=[pltpu.VMEM((C, 128), jnp.float32)] * 3,
        ),
        compiler_params=pltpu.CompilerParams(
            dimension_semantics=("parallel", "arbitrary"),
            vmem_limit_bytes=vmem_limit),
    )(x, labels)
    return jnp.mean(out[:, 0, 0])


def _gdice_ref(net_output, gt_labels, smooth=SMOOTH):
    """Pure-JAX reference mirroring the PyTorch forward."""
    B, C, H, W = net_output.shape
    y = jnp.transpose(jax.nn.one_hot(gt_labels, C, dtype=jnp.float32),
                      (0, 3, 1, 2))
    sm = jax.nn.softmax(net_output.astype(jnp.float32), axis=1)
    sum_y = jnp.einsum("bcxy->bc", y)
    sum_s = jnp.einsum("bcxy->bc", sm)
    inter = jnp.einsum("bcxy,bcxy->bc", sm, y)
    w = 1.0 / ((sum_y + 1e-10) ** 2)
    intersection = w * inter
    union = w * (sum_s + sum_y)
    divided = 1.0 - 2.0 * (intersection.sum(-1) + smooth) / (union.sum(-1) + smooth)
    return divided.mean()


if __name__ == "__main__":
    key = jax.random.PRNGKey(0)
    k1, k2 = jax.random.split(key)

    B, C, H, W = 2, 4, 16, 16
    net_output = jax.random.normal(k1, (B, C, H, W), dtype=jnp.float32)
    gt = jax.random.randint(k2, (B, H, W), 0, C, dtype=jnp.int32)

    loss = gdice_loss(net_output, gt)
    loss = jax.block_until_ready(loss)

    ref = _gdice_ref(net_output, gt)
    # approx=True reciprocal in the softmax -> loosen tolerance slightly.
    assert jnp.allclose(loss, ref, atol=2e-3, rtol=2e-3), (loss, ref)

    print("KERNEL_OK")
</pallas_src>

<mosaic_0001>
module attributes {stable_mosaic.version = 11 : i64} {
  func.func @_gdice_kernel(%arg0: i32, %arg1: i32, %arg2: memref<1x4x2x128xf32, #tpu.memory_space<vmem>>, %arg3: memref<1x2x128xi8, #tpu.memory_space<vmem>>, %arg4: memref<1x8x128xf32, #tpu.memory_space<vmem>>, %arg5: memref<4x128xf32, #tpu.memory_space<vmem>>, %arg6: memref<4x128xf32, #tpu.memory_space<vmem>>, %arg7: memref<4x128xf32, #tpu.memory_space<vmem>>) attributes {dimension_semantics = [#tpu.dimension_semantics<parallel>, #tpu.dimension_semantics<arbitrary>], iteration_bounds = array<i64: 2, 1>, scalar_prefetch = 0 : i64, scratch_operands = 3 : i64, tpu.core_type = #tpu.core_type<tc>, window_params = [{transform_indices = @transform_0, window_bounds = array<i64: 1, 4, 2, 128>}, {transform_indices = @transform_1, window_bounds = array<i64: 1, 2, 128>}, {transform_indices = @transform_2, window_bounds = array<i64: 1, 8, 128>}]} {
    %c0_i32 = arith.constant 0 : i32
    %0 = arith.cmpi eq, %arg1, %c0_i32 : i32
    %1 = arith.extui %0 : i1 to i32
    %c0_i32_0 = arith.constant 0 : i32
    %2 = arith.cmpi ne, %1, %c0_i32_0 : i32
    scf.if %2 {
      %cst_25 = arith.constant 0.000000e+00 : f32
      %40 = vector.broadcast %cst_25 : f32 to vector<4x128xf32>
      %c0_26 = arith.constant 0 : index
      %c0_27 = arith.constant 0 : index
      %41 = vector.load %arg5[%c0_26, %c0_27] : memref<4x128xf32, #tpu.memory_space<vmem>>, vector<4x128xf32>
      tpu.vector_store %arg5[%c0_26, %c0_27], %40 {strides = array<i32>} : memref<4x128xf32, #tpu.memory_space<vmem>>, vector<4x128xf32>,
      %cst_28 = arith.constant 0.000000e+00 : f32
      %42 = vector.broadcast %cst_28 : f32 to vector<4x128xf32>
      %c0_29 = arith.constant 0 : index
      %c0_30 = arith.constant 0 : index
      %43 = vector.load %arg6[%c0_29, %c0_30] : memref<4x128xf32, #tpu.memory_space<vmem>>, vector<4x128xf32>
      tpu.vector_store %arg6[%c0_29, %c0_30], %42 {strides = array<i32>} : memref<4x128xf32, #tpu.memory_space<vmem>>, vector<4x128xf32>,
      %cst_31 = arith.constant 0.000000e+00 : f32
      %44 = vector.broadcast %cst_31 : f32 to vector<4x128xf32>
      %c0_32 = arith.constant 0 : index
      %c0_33 = arith.constant 0 : index
      %45 = vector.load %arg7[%c0_32, %c0_33] : memref<4x128xf32, #tpu.memory_space<vmem>>, vector<4x128xf32>
      tpu.vector_store %arg7[%c0_32, %c0_33], %44 {strides = array<i32>} : memref<4x128xf32, #tpu.memory_space<vmem>>, vector<4x128xf32>,
    } else {
    }
    %c0 = arith.constant 0 : index
    %c0_1 = arith.constant 0 : index
    %c0_2 = arith.constant 0 : index
    %c0_3 = arith.constant 0 : index
    %3 = vector.load %arg2[%c0, %c0_1, %c0_2, %c0_3] : memref<1x4x2x128xf32, #tpu.memory_space<vmem>>, vector<1x4x2x128xf32>
    %4 = vector.shape_cast %3 : vector<1x4x2x128xf32> to vector<4x2x128xf32>
    %c0_4 = arith.constant 0 : index
    %c0_5 = arith.constant 0 : index
    %c0_6 = arith.constant 0 : index
    %5 = vector.load %arg3[%c0_4, %c0_5, %c0_6] : memref<1x2x128xi8, #tpu.memory_space<vmem>>, vector<1x2x128xi8>
    %6 = vector.shape_cast %5 : vector<1x2x128xi8> to vector<2x128xi8>
    %7 = arith.extsi %6 : vector<2x128xi8> to vector<2x128xi32>
    %cst = arith.constant dense<0xFF800000> : vector<2x128xf32>
    %8 = vector.multi_reduction <maximumf>, %4, %cst [0] : vector<4x2x128xf32> to vector<2x128xf32>
    %9 = vector.shape_cast %8 : vector<2x128xf32> to vector<1x2x128xf32>
    %10 = vector.broadcast %9 : vector<1x2x128xf32> to vector<4x2x128xf32>
    %11 = arith.subf %4, %10 : vector<4x2x128xf32>
    %12 = math.exp %11 : vector<4x2x128xf32>
    %cst_7 = arith.constant dense<0.000000e+00> : vector<2x128xf32>
    %13 = vector.multi_reduction <add>, %12, %cst_7 [0] : vector<4x2x128xf32> to vector<2x128xf32>
    %14 = vector.shape_cast %13 : vector<2x128xf32> to vector<1x2x128xf32>
    %15 = tpu.reciprocal %14 {approx = true} : vector<1x2x128xf32> -> vector<1x2x128xf32>
    %16 = vector.broadcast %15 : vector<1x2x128xf32> to vector<4x2x128xf32>
    %17 = arith.mulf %12, %16 : vector<4x2x128xf32>
    %18 = tpu.iota {dimensions = array<i32: 0>} : vector<4x2x128xi32>
    %19 = vector.shape_cast %7 : vector<2x128xi32> to vector<1x2x128xi32>
    %20 = vector.broadcast %19 : vector<1x2x128xi32> to vector<4x2x128xi32>
    %21 = arith.cmpi eq, %18, %20 : vector<4x2x128xi32>
    %22 = arith.extui %21 : vector<4x2x128xi1> to vector<4x2x128xi32>
    %23 = arith.sitofp %22 : vector<4x2x128xi32> to vector<4x2x128xf32>
    %c0_8 = arith.constant 0 : index
    %c0_9 = arith.constant 0 : index
    %24 = vector.load %arg5[%c0_8, %c0_9] : memref<4x128xf32, #tpu.memory_space<vmem>>, vector<4x128xf32>
    %cst_10 = arith.constant dense<0.000000e+00> : vector<4x128xf32>
    %25 = vector.multi_reduction <add>, %23, %cst_10 [1] : vector<4x2x128xf32> to vector<4x128xf32>
    %26 = arith.addf %24, %25 : vector<4x128xf32>
    %c0_11 = arith.constant 0 : index
    %c0_12 = arith.constant 0 : index
    %27 = vector.load %arg5[%c0_11, %c0_12] : memref<4x128xf32, #tpu.memory_space<vmem>>, vector<4x128xf32>
    tpu.vector_store %arg5[%c0_11, %c0_12], %26 {strides = array<i32>} : memref<4x128xf32, #tpu.memory_space<vmem>>, vector<4x128xf32>,
    %c0_13 = arith.constant 0 : index
    %c0_14 = arith.constant 0 : index
    %28 = vector.load %arg6[%c0_13, %c0_14] : memref<4x128xf32, #tpu.memory_space<vmem>>, vector<4x128xf32>
    %cst_15 = arith.constant dense<0.000000e+00> : vector<4x128xf32>
    %29 = vector.multi_reduction <add>, %17, %cst_15 [1] : vector<4x2x128xf32> to vector<4x128xf32>
    %30 = arith.addf %28, %29 : vector<4x128xf32>
    %c0_16 = arith.constant 0 : index
    %c0_17 = arith.constant 0 : index
    %31 = vector.load %arg6[%c0_16, %c0_17] : memref<4x128xf32, #tpu.memory_space<vmem>>, vector<4x128xf32>
    tpu.vector_store %arg6[%c0_16, %c0_17], %30 {strides = array<i32>} : memref<4x128xf32, #tpu.memory_space<vmem>>, vector<4x128xf32>,
    %c0_18 = arith.constant 0 : index
    %c0_19 = arith.constant 0 : index
    %32 = vector.load %arg7[%c0_18, %c0_19] : memref<4x128xf32, #tpu.memory_space<vmem>>, vector<4x128xf32>
    %33 = arith.mulf %17, %23 : vector<4x2x128xf32>
    %cst_20 = arith.constant dense<0.000000e+00> : vector<4x128xf32>
    %34 = vector.multi_reduction <add>, %33, %cst_20 [1] : vector<4x2x128xf32> to vector<4x128xf32>
    %35 = arith.addf %32, %34 : vector<4x128xf32>
    %c0_21 = arith.constant 0 : index
    %c0_22 = arith.constant 0 : index
    %36 = vector.load %arg7[%c0_21, %c0_22] : memref<4x128xf32, #tpu.memory_space<vmem>>, vector<4x128xf32>
    tpu.vector_store %arg7[%c0_21, %c0_22], %35 {strides = array<i32>} : memref<4x128xf32, #tpu.memory_space<vmem>>, vector<4x128xf32>,
    %c0_i32_23 = arith.constant 0 : i32
    %37 = arith.cmpi eq, %arg1, %c0_i32_23 : i32
    %38 = arith.extui %37 : i1 to i32
    %c0_i32_24 = arith.constant 0 : i32
    %39 = arith.cmpi ne, %38, %c0_i32_24 : i32
    scf.if %39 {
      %c0_25 = arith.constant 0 : index
      %c0_26 = arith.constant 0 : index
      %40 = vector.load %arg5[%c0_25, %c0_26] : memref<4x128xf32, #tpu.memory_space<vmem>>, vector<4x128xf32>
      %cst_27 = arith.constant dense<0.000000e+00> : vector<4xf32>
      %41 = vector.multi_reduction <add>, %40, %cst_27 [1] : vector<4x128xf32> to vector<4xf32>
      %42 = vector.shape_cast %41 : vector<4xf32> to vector<4x1xf32>
      %c0_28 = arith.constant 0 : index
      %c0_29 = arith.constant 0 : index
      %43 = vector.load %arg6[%c0_28, %c0_29] : memref<4x128xf32, #tpu.memory_space<vmem>>, vector<4x128xf32>
      %cst_30 = arith.constant dense<0.000000e+00> : vector<4xf32>
      %44 = vector.multi_reduction <add>, %43, %cst_30 [1] : vector<4x128xf32> to vector<4xf32>
      %45 = vector.shape_cast %44 : vector<4xf32> to vector<4x1xf32>
      %c0_31 = arith.constant 0 : index
      %c0_32 = arith.constant 0 : index
      %46 = vector.load %arg7[%c0_31, %c0_32] : memref<4x128xf32, #tpu.memory_space<vmem>>, vector<4x128xf32>
      %cst_33 = arith.constant dense<0.000000e+00> : vector<4xf32>
      %47 = vector.multi_reduction <add>, %46, %cst_33 [1] : vector<4x128xf32> to vector<4xf32>
      %48 = vector.shape_cast %47 : vector<4xf32> to vector<4x1xf32>
      %cst_34 = arith.constant 1.000000e-10 : f32
      %49 = vector.broadcast %cst_34 : f32 to vector<4x1xf32>
      %50 = arith.addf %42, %49 : vector<4x1xf32>
      %51 = arith.mulf %50, %50 : vector<4x1xf32>
      %cst_35 = arith.constant 1.000000e+00 : f32
      %52 = vector.broadcast %cst_35 : f32 to vector<4x1xf32>
      %53 = arith.divf %52, %51 : vector<4x1xf32>
      %54 = arith.mulf %53, %48 : vector<4x1xf32>
      %55 = vector.shape_cast %54 : vector<4x1xf32> to vector<1x4x1xf32>
      %cst_36 = arith.constant dense<0.000000e+00> : vector<1xf32>
      %56 = vector.multi_reduction <add>, %55, %cst_36 [1, 2] : vector<1x4x1xf32> to vector<1xf32>
      %57 = vector.shape_cast %56 : vector<1xf32> to vector<1x1x1xf32>
      %58 = vector.extract %57[0, 0, 0] : f32 from vector<1x1x1xf32>
      %59 = arith.addf %45, %42 : vector<4x1xf32>
      %60 = arith.mulf %53, %59 : vector<4x1xf32>
      %61 = vector.shape_cast %60 : vector<4x1xf32> to vector<1x4x1xf32>
      %cst_37 = arith.constant dense<0.000000e+00> : vector<1xf32>
      %62 = vector.multi_reduction <add>, %61, %cst_37 [1, 2] : vector<1x4x1xf32> to vector<1xf32>
      %63 = vector.shape_cast %62 : vector<1xf32> to vector<1x1x1xf32>
      %64 = vector.extract %63[0, 0, 0] : f32 from vector<1x1x1xf32>
      %cst_38 = arith.constant 9.99999974E-6 : f32
      %65 = arith.addf %58, %cst_38 : f32
      %cst_39 = arith.constant 2.000000e+00 : f32
      %66 = arith.mulf %cst_39, %65 : f32
      %cst_40 = arith.constant 9.99999974E-6 : f32
      %67 = arith.addf %64, %cst_40 : f32
      %68 = arith.divf %66, %67 : f32
      %cst_41 = arith.constant 1.000000e+00 : f32
      %69 = arith.subf %cst_41, %68 : f32
      %70 = vector.broadcast %69 : f32 to vector<1x8x128xf32>
      %c0_42 = arith.constant 0 : index
      %c0_43 = arith.constant 0 : index
      %c0_44 = arith.constant 0 : index
      %71 = vector.load %arg4[%c0_42, %c0_43, %c0_44] : memref<1x8x128xf32, #tpu.memory_space<vmem>>, vector<1x8x128xf32>
      tpu.vector_store %arg4[%c0_42, %c0_43, %c0_44], %70 {strides = array<i32>} : memref<1x8x128xf32, #tpu.memory_space<vmem>>, vector<1x8x128xf32>,
    } else {
    }
    return
  }
  func.func @transform_0(%arg0: i32, %arg1: i32) -> (i32, i32, i32, i32) {
    %c0_i32 = arith.constant 0 : i32
    %c0_i32_0 = arith.constant 0 : i32
    %c0_i32_1 = arith.constant 0 : i32
    return %arg0, %c0_i32, %arg1, %c0_i32_0 : i32, i32, i32, i32
  }
  func.func @transform_1(%arg0: i32, %arg1: i32) -> (i32, i32, i32) {
    %c0_i32 = arith.constant 0 : i32
    %c0_i32_0 = arith.constant 0 : i32
    return %arg0, %arg1, %c0_i32 : i32, i32, i32
  }
  func.func @transform_2(%arg0: i32, %arg1: i32) -> (i32, i32, i32) {
    %c0_i32 = arith.constant 0 : i32
    %c0_i32_0 = arith.constant 0 : i32
    %c0_i32_1 = arith.constant 0 : i32
    return %arg0, %c0_i32, %c0_i32_0 : i32, i32, i32
  }
}

</mosaic_0001>

<bundles_post_ra>
// kernel: tpu_custom_call.1
= control target key start
LH: loop header
LB: loop body
LE: loop exit
PB: predicated region body
PF: predicated region fallthrough
CT: control target
= control target key end

     0   :  { %7 = vsyncpa [#allocation6], 0  ;;  %s1011_s0 = inlined_call_operand.hbm [shape: f32[2,4,2,128], index: 0, kind: input, shape index: {}]   ;;  %s1012_s1 = inlined_call_operand.vmem [shape: s8[2,2,128], index: 1, kind: input, shape index: {}]   ;;  %s1013_s2 = inlined_call_operand.hbm [shape: f32[2,8,128], index: 2, kind: output, shape index: {}]  }
   0x1   :  { %9 = vsyncpa [#allocation6 + $0x1], 0 }
   0x2   :  { %10 = vsyncpa [#allocation7], 0 }
   0x3   :  { %12 = vsyncpa [#allocation7 + $0x1], 0  ;;  %s781_s9 = smov 0   ;;  %s783_s10 = smov 0  }
   0x4   :  { %s785_s11 = smov 0   ;;  %s787_s12 = smov 0  }
   0x5   :  { %s789_s13 = smov 0   ;;  %s791_s14 = smov 0  }
   0x6 LB: > { %s543_s15 = sadd.s32 4294967295, %s759_s14   ;;  %s544_s16 = sadd.s32 4294967294, %s759_s14   ;;  %s759_s14 = sphi %s791_s14, %s18_s14   ;;  %s755_s13 = sphi %s789_s13, %s1028_s13   ;;  %s751_s12 = sphi %s787_s12, %s1027_s12   ;;  %s747_s11 = sphi %s785_s11, %s1026_s11   ;;  %s743_s10 = sphi %s783_s10, %s1025_s10   ;;  %s739_s9 = sphi %s781_s9, %s1024_s9  }
   0x7   : > { %s30_s17 = sadd.s32 1, %s755_s13  ;;  %s39_s18 = sadd.s32 1, %s747_s11 }
   0x8   : > { %p32_p0 = scmp.ge.s32.totalorder %s30_s17, 2  ;;  %p46_p1 = scmp.ne.s32.totalorder %s747_s11, %s743_s10 }
   0x9   : > { %p47_p2 = scmp.eq.s32.totalorder %s759_s14, 0  ;;  %p52_p3 = scmp.ne.s32.totalorder %s743_s10, %s739_s9 }
   0xa   : > { %s1030_s17 = smov (%p32_p0, %s30_s17), 0  ;;  %p53_p5 = scmp.eq.s32.totalorder %s543_s15, 0 }
   0xb   : > { %p822_p4 = por %p47_p2, %p46_p1  ;;  %s34_s20 = ssub.s32 %s755_s13, %s1030_s17 }
   0xc   : > { %p104_p6 = scmp.eq.s32.totalorder %s543_s15, 1  ;;  %p37_p7 = scmp.eq.s32.totalorder %s34_s20, 0 }
   0xd   : > { %p828_p8 = por %p53_p5, %p52_p3  ;;  %p110_p10 = scmp.eq.s32.totalorder %s544_s16, 1 }
   0xe   : > { %p832_p9 = por %p104_p6, %p46_p1  ;;  %p580_p13 = scmp.lt.s32.totalorder %s759_s14, 2 }
   0xf   : > { %s837_s23 = scalar_select %p37_p7, %s747_s11, %s39_s18  }
  0x10   : > { %s1017_s22 = scalar_select %p832_p9, 1, 0 }
  0x11   : > { %p839_p11 = por %p110_p10, %p52_p3  ;;  %s130_s25 = sand.u32 1, %s747_s11  }
  0x12   : > { %s547_s26 = sshll.u32 %s130_s25, 3  ;;  %s561_s27 = sshll.u32 %s755_s13, 7 }
  0x13   : > { %s1018_s24 = scalar_select %p839_p11, 1, 0 }
  0x14   : > { %s850_s30 = scalar_lea.hbm %s1011_s0, %s561_s27  ;;  %s134_s3 = scalar_lea.vmem [#allocation5], %s547_s26 }
  0x15   : > { %s142_s4 = sshll.u32 %s134_s3, 4  ;;  %p856_p0 = pnand %p580_p13, %p822_p4  ;;  %s852_s4 = int_to_ptr.vmem [resolvable:$true] %s142_s4 }
  0x16   : > { %s861_s6 = scalar_lea.sflag [#allocation6], %s130_s25  ;;  %s647_s7 = scalar_lea.hbm %s850_s30, 128 }
  0x17   : > { %p648_p2 = scmp.ne.s32.totalorder %s850_s30, %s647_s7  ;;  %p649_p3 = pneg %p856_p0 }
  0x18   : > { %s652_s16 = scalar_lea.hbm %s1011_s0, 256  ;;  %p653_p4 = scmp.lt.u32.totalorder %s850_s30, %s1011_s0 }
  0x19   : > { %p650_p5 = pnand %p649_p3, %p648_p2  ;;  %p654_p7 = scmp.lt.u32.totalorder %s652_s16, %s647_s7 }
  0x1a   : > { %p656_p13 = scmp.lt.u32.totalorder %s647_s7, %s850_s30 }
  0x1b   : > { %p651_p6 = pneg %p650_p5  ;;  %p655_p10 = por %p654_p7, %p653_p4 }
  0x1d   : > { %p657_p12 = por %p656_p13, %p655_p10 }
  0x1f   : > { %p658_p1 = pnand %p657_p12, %p651_p6 }
  0x21   : > { %661 = shalt.err (!%p658_p1)
}
  0x22   : > { %s662_s20 = scalar_lea.vmem %s852_s4, 128  ;;  %s761_s25 = smov [#allocation5]  }
  0x23   : > { %p663_p2 = scmp.ne.s32.totalorder %s852_s4, %s662_s20  ;;  %s667_s26 = sshll.u32 %s761_s25, 4  ;;  %s668_s26 = int_to_ptr.vmem [resolvable:$false] %s667_s26 }
  0x24   : > { %s669_s27 = scalar_lea.vmem %s668_s26, 256  ;;  %p670_p9 = scmp.lt.s32.totalorder %s852_s4, %s668_s26 }
  0x25   : > { %p665_p5 = pnand %p663_p2, %p649_p3  ;;  %p671_p4 = scmp.lt.s32.totalorder %s669_s27, %s662_s20 }
  0x27   : > { %p666_p11 = pneg %p665_p5  ;;  %p672_p7 = por %p671_p4, %p670_p9 }
  0x29   : > { %p673_p10 = pnand %p672_p7, %p666_p11 }
  0x2b   : > { %676 = shalt.err (!%p673_p10)
}
  0x2c   : > { %s762_s28 = smov 32   ;;  %s763_s29 = smov 2  }
  0x2d   : > { %575 = dma.hbm_to_vmem [thread:$0]  (!%p856_p0), %s850_s30, 128, %s852_s4, %s861_s6, %s762_s28, %s762_s28, %s763_s29  }
  0x2e   : > { %p159_p12 = scmp.lt.s32.totalorder %s759_s14, 3  ;;  %p1020_p1 = scmp.ge.s32.totalorder %s759_s14, 1 }
  0x30   : > { %p160_p3 = pnand %p1020_p1, %p159_p12 }
  0x31   : > { %s893_s3 = sand.u32 (!%p160_p3), 1, %s743_s10  }
  0x32   : > { %163 = sbr.rel (%p160_p3) target bundleno = 572 (0x23c), region = 28  ;;  %s551_s7 = sshll.u32 (!%p160_p3), %s893_s3, 3 }
  0x33   : > { %s166_s8 = scalar_lea.sflag (!%p160_p3), [#allocation6], %s893_s3  ;;  %s169_s15 = scalar_lea.vmem (!%p160_p3), [#allocation5], %s551_s7 }
  0x39   : > { %730 = dma.done.wait (%p828_p8), %s166_s8, 128  }
  0x3a   : > { %732 = vsyncadd (%p828_p8), %s166_s8, 4294967168  ;;  %p196_p9 = scmp.lt.s32.totalorder %s751_s12, 1  ;;  %v764_v0 = vmov 0.0   ;;  %vm215_vm0 = vcmask 1041408   ;;  %v209_v2 = vld [vmem:[%s169_s15] sm:$0x3] }
  0x3b   : > { %206 = vst [vmem:[#allocation2] sm:$0xf] %v764_v0  ;;  %207 = vst [vmem:[#allocation3] sm:$0xf] %v764_v0  ;;  %v210_v3 = vld [vmem:[%s169_s15 + $0x2] sm:$0x3] }
  0x3c   : > { %208 = vst [vmem:[#allocation4] sm:$0xf] %v764_v0  ;;  %s197_s30 = scalar_select %p196_p9, %s751_s12, 1  ;;  %v211_v5 = vld [vmem:[%s169_s15 + $0x4] sm:$0x3]  ;;  %v216_v7 = vsel %vm215_vm0, %v209_v2, -inf }
  0x3d   : > { %v212_v6 = vld [vmem:[%s169_s15 + $0x6] sm:$0x3]  ;;  %v217_v8 = vsel %vm215_vm0, %v210_v3, -inf  ;;  %v218_v9 = vsel %vm215_vm0, %v211_v5, -inf  ;;  %vm292_vm5 = vcmask 1041409   ;;  %vm294_vm6 = vcmask 1042434  }
  0x3e   : > { %s201_s6 = scalar_lea.vmem %s1012_s1, %s197_s30  ;;  %v219_v10 = vsel %vm215_vm0, %v212_v6, -inf  ;;  %v220_v23 = vmax.f32 %v216_v7, %v217_v8  ;;  %vm296_vm7 = vcmask 1043459   ;;  %vm387_vm8 = vcmask 1043456   ;;  %s558_s26 = sshll.u32 %s751_s12, 7 }
  0x3f   : > { %v213_v1 = vld [vmem:[%s201_s6] sm:$0x1]  ;;  %v221_v24 = vmax.f32 %v218_v9, %v219_v10  ;;  %vm404_vm9 = vcmask 3072   ;;  %s195_s28 = scalar_lea.vmem [#allocation8], %s551_s7  ;;  %s962_s4 = scalar_lea.hbm %s1013_s2, %s558_s26 }
  0x40   : > { %v214_v4 = vunpack.c.0.s8 %v213_v1  ;;  %s451_s29 = sshll.u32 %s195_s28, 4  ;;  %s438_s5 = scalar_lea.sflag [#allocation7], %s893_s3  ;;  %s964_s29 = int_to_ptr.vmem [resolvable:$true] %s451_s29 }
  0x41   : > { %v222_v29 = vmax.f32 %v220_v23, %v221_v24  ;;  %s677_s6 = scalar_lea.vmem %s964_s29, 128  ;;  %p1021_p11 = scmp.ne.s32.totalorder %s1017_s22, 0 }
  0x42   : > { %vm247_vm1 = vcmp.eq.s32.totalorder %v214_v4, 0  ;;  %vm248_vm2 = vcmp.eq.s32.totalorder %v214_v4, 1  ;;  %vm249_vm3 = vcmp.eq.s32.totalorder %v214_v4, 2  ;;  %vm250_vm4 = vcmp.eq.s32.totalorder %v214_v4, 3  ;;  %v259_v54 = vld [vmem:[#allocation2] sm:$0xf]  ;;  %p678_p8 = scmp.ne.s32.totalorder %s964_s29, %s677_s6 }
  0x43   : > { %v912_v11 = vsel %vm247_vm1, 1.0, %v764_v0  ;;  %v914_v12 = vsel %vm248_vm2, 1.0, %v764_v0  ;;  %v916_v13 = vsel %vm249_vm3, 1.0, %v764_v0  ;;  %v918_v14 = vsel %vm250_vm4, 1.0, %v764_v0  ;;  %s765_s12 = smov [#allocation8]  }
  0x44   : > { %v260_v15 = vsel %vm215_vm0, %v912_v11, 0.0  ;;  %v267_v16 = vsel %vm215_vm0, %v914_v12, 0.0  ;;  %v274_v17 = vsel %vm215_vm0, %v916_v13, 0.0  ;;  %v281_v18 = vsel %vm215_vm0, %v918_v14, 0.0  ;;  %p679_p0 = pnand %p678_p8, %p1021_p11  ;;  %s681_s7 = sshll.u32 %s765_s12, 4  ;;  %s682_s7 = int_to_ptr.vmem [resolvable:$false] %s681_s7 }
  0x45   : > { %v261_v19 = vrot.slane %v260_v15, 4  ;;  %v268_v20 = vrot.slane %v267_v16, 4  ;;  %v275_v21 = vrot.slane %v274_v17, 4  ;;  %v282_v22 = vrot.slane %v281_v18, 4  ;;  %p684_p13 = scmp.lt.s32.totalorder %s964_s29, %s682_s7 }
  0x46   : > { %v223_v34 = vsub.f32 %v209_v2, %v222_v29  ;;  %v224_v35 = vsub.f32 %v210_v3, %v222_v29  ;;  %v225_v36 = vsub.f32 %v211_v5, %v222_v29  ;;  %v226_v37 = vsub.f32 %v212_v6, %v222_v29  ;;  %p680_p6 = pneg %p679_p0 }
  0x47   : > { %v262_v25 = vadd.f32 %v261_v19, %v260_v15  ;;  %v269_v26 = vadd.f32 %v268_v20, %v267_v16  ;;  %v276_v27 = vadd.f32 %v275_v21, %v274_v17  ;;  %v283_v28 = vadd.f32 %v282_v22, %v281_v18 }
  0x48   : > { %v227_v42 = vmul.f32 1.442695, %v223_v34  ;;  %v229_v43 = vmul.f32 1.442695, %v224_v35  ;;  %v231_v44 = vmul.f32 1.442695, %v225_v36 }
  0x49   : > { %v263_v30 = vrot.slane %v262_v25, 2  ;;  %v270_v31 = vrot.slane %v269_v26, 2  ;;  %v277_v32 = vrot.slane %v276_v27, 2  ;;  %v284_v33 = vrot.slane %v283_v28, 2 }
  0x4a   : > { %633 = vpow2.f32 %v227_v42  ;;  %v233_v49 = vmul.f32 1.442695, %v226_v37 }
  0x4b   : > { %v264_v38 = vadd.f32 %v263_v30, %v262_v25  ;;  %v271_v39 = vadd.f32 %v270_v31, %v269_v26  ;;  %v278_v40 = vadd.f32 %v277_v32, %v276_v27  ;;  %v285_v41 = vadd.f32 %v284_v33, %v283_v28 }
  0x4c   : > { %635 = vpow2.f32 %v229_v43 }
  0x4d   : > { %v265_v45 = vrot.slane %v264_v38, 1  ;;  %v272_v46 = vrot.slane %v271_v39, 1  ;;  %v279_v47 = vrot.slane %v278_v40, 1  ;;  %v286_v48 = vrot.slane %v285_v41, 1 }
  0x4e   : > { %637 = vpow2.f32 %v231_v44 }
  0x4f   : > { %v266_v50 = vadd.f32 %v265_v45, %v264_v38  ;;  %v273_v51 = vadd.f32 %v272_v46, %v271_v39  ;;  %v280_v52 = vadd.f32 %v279_v47, %v278_v40  ;;  %v287_v53 = vadd.f32 %v286_v48, %v285_v41 }
  0x50   : > { %639 = vpow2.f32 %v233_v49 }
  0x51   : > { %v293_v55 = vsel %vm292_vm5, %v273_v51, %v266_v50 }
  0x52   : > { %v295_v56 = vsel %vm294_vm6, %v280_v52, %v293_v55 }
  0x53   : > { %v297_v57 = vsel %vm296_vm7, %v287_v53, %v295_v56 }
  0x54   : > { %v299_v58 = vadd.f32 %v297_v57, %v259_v54  ;;  %v634_v59 = vpop.eup %633 }
  0x55   : > { %v235_v60 = vsel %vm215_vm0, %v634_v59, 0.0 }
  0x56   : > { %300 = vst [vmem:[#allocation2] sm:$0xf] %v299_v58  ;;  %v636_v61 = vpop.eup %635 }
  0x57   : > { %v236_v63 = vsel %vm215_vm0, %v636_v61, 0.0 }
  0x58   : > { %v638_v62 = vpop.eup %637  ;;  %v237_v1 = vadd.f32 %v236_v63, %v235_v60 }
  0x59   : > { %v238_v2 = vsel %vm215_vm0, %v638_v62, 0.0 }
  0x5a   : > { %v640_v0 = vpop.eup %639  ;;  %v239_v6 = vadd.f32 %v238_v2, %v237_v1  ;;  %v301_v1 = vld [vmem:[#allocation3] sm:$0xf] }
  0x5b   : > { %v240_v4 = vsel %vm215_vm0, %v640_v0, 0.0 }
  0x5c   : > { %v241_v7 = vadd.f32 %v240_v4, %v239_v6 }
  0x5d   : > { %v386_v3 = vld [vmem:[#allocation2] sm:$0xf] }
  0x5e   : > { %v388_v5 = vsel %vm387_vm8, %v386_v3, 0.0  ;;  %641 = vrcp.f32 %v241_v7 }
  0x5f   : > { %389 = vadd.xlane.f32.xlu0 %v388_v5 }
  0x68   : > { %v642_v8 = vpop.eup %641 }
  0x69   : > { %v243_v9 = vmul.f32 %v642_v8, %v634_v59  ;;  %v244_v10 = vmul.f32 %v642_v8, %v636_v61  ;;  %v245_v15 = vmul.f32 %v642_v8, %v638_v62  ;;  %v246_v16 = vmul.f32 %v642_v8, %v640_v0 }
  0x6b   : > { %v302_v17 = vsel %vm215_vm0, %v243_v9, 0.0  ;;  %v309_v18 = vsel %vm215_vm0, %v244_v10, 0.0  ;;  %v316_v19 = vsel %vm215_vm0, %v245_v15, 0.0  ;;  %v323_v20 = vsel %vm215_vm0, %v246_v16, 0.0 }
  0x6c   : > { %v303_v21 = vrot.slane %v302_v17, 4  ;;  %v310_v22 = vrot.slane %v309_v18, 4  ;;  %v317_v23 = vrot.slane %v316_v19, 4  ;;  %v324_v24 = vrot.slane %v323_v20, 4 }
  0x6d   : > { %v341_v25 = vmul.f32 %v912_v11, %v243_v9  ;;  %v342_v26 = vmul.f32 %v914_v12, %v244_v10  ;;  %v343_v27 = vmul.f32 %v916_v13, %v245_v15  ;;  %v344_v28 = vmul.f32 %v918_v14, %v246_v16 }
  0x6e   : > { %v304_v29 = vadd.f32 %v303_v21, %v302_v17  ;;  %v311_v30 = vadd.f32 %v310_v22, %v309_v18  ;;  %v318_v31 = vadd.f32 %v317_v23, %v316_v19  ;;  %v325_v32 = vadd.f32 %v324_v24, %v323_v20  ;;  %v340_v18 = vld [vmem:[#allocation4] sm:$0xf] }
  0x6f   : > { %v345_v33 = vsel %vm215_vm0, %v341_v25, 0.0  ;;  %v352_v34 = vsel %vm215_vm0, %v342_v26, 0.0  ;;  %v359_v35 = vsel %vm215_vm0, %v343_v27, 0.0  ;;  %v366_v36 = vsel %vm215_vm0, %v344_v28, 0.0 }
  0x70   : > { %v305_v37 = vrot.slane %v304_v29, 2  ;;  %v312_v11 = vrot.slane %v311_v30, 2  ;;  %v319_v38 = vrot.slane %v318_v31, 2  ;;  %v326_v12 = vrot.slane %v325_v32, 2 }
  0x71   : > { %v346_v39 = vrot.slane %v345_v33, 4  ;;  %v353_v13 = vrot.slane %v352_v34, 4  ;;  %v360_v40 = vrot.slane %v359_v35, 4  ;;  %v367_v14 = vrot.slane %v366_v36, 4 }
  0x72   : > { %v306_v41 = vadd.f32 %v305_v37, %v304_v29  ;;  %v313_v42 = vadd.f32 %v312_v11, %v311_v30  ;;  %v320_v43 = vadd.f32 %v319_v38, %v318_v31  ;;  %v327_v44 = vadd.f32 %v326_v12, %v325_v32 }
  0x73   : > { %v347_v45 = vadd.f32 %v346_v39, %v345_v33  ;;  %v354_v46 = vadd.f32 %v353_v13, %v352_v34  ;;  %v361_v47 = vadd.f32 %v360_v40, %v359_v35  ;;  %v368_v48 = vadd.f32 %v367_v14, %v366_v36 }
  0x74   : > { %v307_v49 = vrot.slane %v306_v41, 1  ;;  %v314_v50 = vrot.slane %v313_v42, 1  ;;  %v321_v51 = vrot.slane %v320_v43, 1  ;;  %v328_v52 = vrot.slane %v327_v44, 1 }
  0x75   : > { %v348_v53 = vrot.slane %v347_v45, 2  ;;  %v355_v54 = vrot.slane %v354_v46, 2  ;;  %v362_v55 = vrot.slane %v361_v47, 2  ;;  %v369_v56 = vrot.slane %v368_v48, 2 }
  0x76   : > { %v308_v57 = vadd.f32 %v307_v49, %v306_v41  ;;  %v315_v58 = vadd.f32 %v314_v50, %v313_v42  ;;  %v322_v59 = vadd.f32 %v321_v51, %v320_v43  ;;  %v329_v60 = vadd.f32 %v328_v52, %v327_v44 }
  0x77   : > { %v349_v61 = vadd.f32 %v348_v53, %v347_v45  ;;  %v356_v62 = vadd.f32 %v355_v54, %v354_v46  ;;  %v363_v63 = vadd.f32 %v362_v55, %v361_v47  ;;  %v370_v0 = vadd.f32 %v369_v56, %v368_v48 }
  0x78   : > { %v334_v2 = vsel %vm292_vm5, %v315_v58, %v308_v57 }
  0x79   : > { %v335_v3 = vsel %vm294_vm6, %v322_v59, %v334_v2  ;;  %v350_v4 = vrot.slane %v349_v61, 1  ;;  %v357_v5 = vrot.slane %v356_v62, 1  ;;  %v364_v6 = vrot.slane %v363_v63, 1 }
  0x7a   : > { %v336_v7 = vsel %vm296_vm7, %v329_v60, %v335_v3  ;;  %v371_v8 = vrot.slane %v370_v0, 1 }
  0x7b   : > { %v338_v9 = vadd.f32 %v336_v7, %v301_v1  ;;  %v351_v10 = vadd.f32 %v350_v4, %v349_v61  ;;  %v358_v15 = vadd.f32 %v357_v5, %v356_v62  ;;  %v365_v16 = vadd.f32 %v364_v6, %v363_v63 }
  0x7c   : > { %v372_v17 = vadd.f32 %v371_v8, %v370_v0 }
  0x7d   : > { %339 = vst [vmem:[#allocation3] sm:$0xf] %v338_v9  ;;  %v377_v19 = vsel %vm292_vm5, %v358_v15, %v351_v10 }
  0x7e   : > { %v378_v20 = vsel %vm294_vm6, %v365_v16, %v377_v19 }
  0x7f   : > { %v379_v21 = vsel %vm296_vm7, %v372_v17, %v378_v20 }
  0x80   : > { %v381_v22 = vadd.f32 %v379_v21, %v340_v18 }
  0x82   : > { %382 = vst [vmem:[#allocation4] sm:$0xf] %v381_v22 }
  0x84   : > { %v391_v23 = vld [vmem:[#allocation3] sm:$0xf] }
  0x85   : > { %v392_v24 = vsel %vm387_vm8, %v391_v23, 0.0 }
  0x86   : > { %393 = vadd.xlane.f32.xlu0 %v392_v24 }
  0x89   : > { %v395_v25 = vld [vmem:[#allocation4] sm:$0xf] }
  0x8a   : > { %v396_v26 = vsel %vm387_vm8, %v395_v25, 0.0 }
  0x8b   : > { %397 = vadd.xlane.f32.xlu1 %v396_v26 }
  0xec   : > { %v390_v27 = vpop.xlane.xlu0 %389 }
  0xed   : > { %v399_v28 = vadd.f32 1e-10, %v390_v27 }
  0xef   : > { %v400_v29 = vmul.f32 %v399_v28, %v399_v28 }
  0xf1   : > { %643 = vrcp.f32 %v400_v29 }
  0xfb   : > { %v644_v30 = vpop.eup %643 }
 0x113   : > { %v394_v31 = vpop.xlane.xlu0 %393 }
 0x114   : > { %v415_v32 = vadd.f32 %v394_v31, %v390_v27 }
 0x116   : > { %v416_v33 = vmul.f32 %v644_v30, %v415_v32 }
 0x118   : > { %v398_v34 = vpop.xlane.xlu1 %397  ;;  %v417_v35 = vsel %vm404_vm9, %v416_v33, 0.0 }
 0x119   : > { %v403_v36 = vmul.f32 %v644_v30, %v398_v34  ;;  %418 = vadd.xlane.f32.xlu0 %v417_v35 }
 0x11b   : > { %v405_v37 = vsel %vm404_vm9, %v403_v36, 0.0 }
 0x11c   : > { %406 = vadd.xlane.f32.xlu1 %v405_v37 }
 0x1a6   : > { %v419_v11 = vpop.xlane.xlu0 %418 }
 0x1a7   : > { %v420_v38 = vrot.slane %v419_v11, 4 }
 0x1a9   : > { %v407_v12 = vpop.xlane.xlu1 %406  ;;  %v421_v39 = vadd.f32 %v420_v38, %v419_v11 }
 0x1aa   : > { %v408_v13 = vrot.slane %v407_v12, 4 }
 0x1ab   : > { %v422_v40 = vrot.slane %v421_v39, 2 }
 0x1ac   : > { %v409_v14 = vadd.f32 %v408_v13, %v407_v12 }
 0x1ad   : > { %v423_v41 = vadd.f32 %v422_v40, %v421_v39 }
 0x1ae   : > { %v410_v42 = vrot.slane %v409_v14, 2 }
 0x1af   : > { %v424_v43 = vrot.slane %v423_v41, 1 }
 0x1b0   : > { %v411_v44 = vadd.f32 %v410_v42, %v409_v14 }
 0x1b1   : > { %v425_v46 = vadd.f32 %v424_v43, %v423_v41 }
 0x1b2   : > { %v412_v45 = vrot.slane %v411_v44, 1 }
 0x1b4   : > { %v413_v47 = vadd.f32 %v412_v45, %v411_v44 }
 0x1b6   : > { %562 = vpush %v413_v47 }
 0x1b7   : > { %564 = vpush %v425_v46 }
 0x1e7   : > { %s563_s21 = spop %562 }
 0x1e8   : > { %s565_s16 = spop %564  ;;  %s427_s19 = sadd.f32 1e-05, %s563_s21 }
 0x1e9   : > { %s429_s18 = sadd.f32 1e-05, %s565_s16  ;;  %s683_s21 = scalar_lea.vmem %s682_s7, 256 }
 0x1ea   : > { %s428_s20 = smul.f32 2.0, %s427_s19  ;;  %p685_p2 = scmp.lt.s32.totalorder %s683_s21, %s677_s6 }
 0x1eb   : > { %v430_v48 = vstv %s429_s18 }
 0x1ec   : > { %645 = vrcp.f32 %v430_v48  ;;  %p686_p5 = por %p685_p2, %p684_p13 }
 0x1ee   : > { %p687_p4 = pnand %p686_p5, %p680_p6 }
 0x1f6   : > { %v646_v49 = vpop.eup %645 }
 0x1f7   : > { %566 = vpush %v646_v49 }
 0x228   : > { %s567_s25 = spop %566 }
 0x229   : > { %s433_s27 = smul.f32 %s567_s25, %s428_s20 }
 0x22b   : > { %s434_s8 = ssub.f32 1.0, %s433_s27 }
 0x22d   : > { %v435_v50 = vstv %s434_s8 }
 0x22e   : > { %436 = vst [vmem:[%s195_s28] sm:$0xff] %v435_v50 }
 0x22f   : > { %690 = shalt.err (!%p687_p4)
}
 0x230   : > { %s691_s3 = scalar_lea.hbm %s962_s4, 128  ;;  %s695_s19 = scalar_lea.hbm %s1013_s2, 256 }
 0x231   : > { %p692_p7 = scmp.ne.s32.totalorder %s962_s4, %s691_s3  ;;  %p696_p1 = scmp.lt.u32.totalorder %s962_s4, %s1013_s2 }
 0x232   : > { %p697_p3 = scmp.lt.u32.totalorder %s695_s19, %s691_s3  ;;  %p699_p8 = scmp.lt.u32.totalorder %s691_s3, %s962_s4 }
 0x233   : > { %p693_p10 = pnand %p692_p7, %p1021_p11 }
 0x234   : > { %p698_p9 = por %p697_p3, %p696_p1 }
 0x235   : > { %p694_p12 = pneg %p693_p10 }
 0x236   : > { %p700_p0 = por %p699_p8, %p698_p9 }
 0x238   : > { %p701_p6 = pnand %p700_p0, %p694_p12 }
 0x23a   : > { %704 = shalt.err (!%p701_p6)
}
 0x23b   : > { %570 = dma.vmem_to_hbm [thread:$0]  (%p1021_p11), %s964_s29, 128, %s962_s4, %s438_s5  }
 0x23c PF: > { %s463_s26 = sand.u32 1, %s739_s9   ;;  %p1022_p13 = scmp.ne.s32.totalorder %s1018_s24, 0 }
 0x23d   : > { %p1023_p2 = scmp.ge.s32.totalorder %s759_s14, 2  ;;  %s464_s27 = scalar_lea.sflag [#allocation7], %s463_s26 }
 0x23f   : > { %p577_p5 = pnand %p1023_p2, %p1022_p13 }
 0x241   : > { %734 = dma.done.wait (!%p577_p5), %s464_s27, 128  }
 0x242   : > { %736 = vsyncadd (!%p577_p5), %s464_s27, 4294967168  ;;  %s18_s14 = sadd.s32 1, %s759_s14   ;;  %s1024_s9 = smov %s743_s10 }
 0x243   : > { %p15_p4 = scmp.ge.s32.totalorder %s18_s14, 4   ;;  %s1025_s10 = smov %s747_s11 }
 0x244   : > { %s1026_s11 = smov %s837_s23  ;;  %s1027_s12 = smov %s755_s13 }
 0x245   : > { %s1028_s13 = smov %s1030_s17  ;;  %17 = sbr.rel (!%p15_p4) target bundleno = 6 (0x6), region = 84 }
 0x24c   :  { %469 = vsyncpa [#allocation6], 1 }
 0x24d   :  { %471 = vsyncpa [#allocation6 + $0x1], 1 }
 0x24e   :  { %472 = vsyncpa [#allocation7], 1 }
 0x24f   :  { %474 = vsyncpa [#allocation7 + $0x1], 1 }

</bundles_post_ra>
